<compile_context>
chip_gen: v7x
topology: tpu7x:2x2x1
jax: 0.10.0
libtpu: 0.0.40
codegen_flags: <defaults>
</compile_context>

<pallas_src>
import functools

import jax
import jax.numpy as jnp
from jax.experimental import pallas as pl
from jax.experimental.pallas import tpu as pltpu


def _round_up(a, b):
    return -(-a // b) * b


@functools.lru_cache(maxsize=1)
def _vmem_capacity_bytes():
    """Per-TensorCore VMEM capacity; conservative fallback = v7x (64 MiB)."""
    try:
        info = pltpu.get_tpu_info()
        cap = int(getattr(info, "vmem_capacity_bytes", 0))
        if cap > 0:
            return cap
    except Exception:
        pass
    return 64 * 1024 * 1024


def _kernel_single_k(x_ref, w_ref, b_ref, o_ref):
    """K fits in one block: o = dot(x, w) + b, no accumulator round-trip."""
    o_ref[...] = (
        jnp.dot(x_ref[...], w_ref[...], preferred_element_type=jnp.float32)
        + b_ref[...]
    ).astype(o_ref.dtype)


def _kernel_split_k(x_ref, w_ref, b_ref, o_ref, acc_ref):
    """K split over grid axis 2: f32 accumulator, bias fused on last step."""
    k = pl.program_id(2)

    @pl.when(k == 0)
    def _():
        acc_ref[...] = jnp.zeros_like(acc_ref)

    acc_ref[...] += jnp.dot(
        x_ref[...], w_ref[...], preferred_element_type=jnp.float32
    )

    @pl.when(k == pl.num_programs(2) - 1)
    def _():
        o_ref[...] = (acc_ref[...] + b_ref[...]).astype(o_ref.dtype)


@functools.partial(jax.jit, static_argnames=("tm", "tn", "tk"))
def conv1d(x, weight, bias, *, tm=None, tn=None, tk=None):
    """GPT-2 Conv1D forward: addmm(bias, x.view(-1, nx), weight).

    No dtype casts are performed here: pass x / weight already in the dtype
    you want on the MXU (e.g. keep weights stored in bf16). Accumulation and
    the bias add are f32; output dtype follows x.dtype.
    """
    nx, nf = weight.shape
    lead_shape = x.shape[:-1]
    M = 1
    for d in lead_shape:
        M *= d
    out_dtype = x.dtype

    x2d = x.reshape(M, nx)

    x_bytes = jnp.dtype(x2d.dtype).itemsize
    w_bytes = jnp.dtype(weight.dtype).itemsize
    out_bytes = jnp.dtype(out_dtype).itemsize

    # ---------------- generation-aware VMEM budget ----------------
    vmem_cap = _vmem_capacity_bytes()
    budget = vmem_cap // 2                          # ~64 MiB v5e/v6e, ~32 MiB v7x
    vmem_limit = min((vmem_cap * 3) // 4, vmem_cap - 8 * 1024 * 1024)

    # ---------------- aligned / padded problem sizes ----------------
    M_p = _round_up(M, 8)            # pad M only to sublane granularity
    nf_p = _round_up(nf, 128)        # lane-dense output stores

    tm_cap = 1024 if budget >= 64 * 1024 * 1024 else 512
    m_cands = [d for d in range(8, min(M_p, tm_cap) + 1, 8) if M_p % d == 0]
    m_cands.sort(reverse=True)       # largest first; always contains 8

    def footprint(tm_, tn_, tk_, acc):
        fp = (2 * tm_ * tk_ * x_bytes          # x tile (double-buffered)
              + 2 * tk_ * tn_ * w_bytes        # w tile
              + 2 * tn_ * 4                    # f32 bias tile
              + 2 * tm_ * tn_ * out_bytes)     # out tile
        if acc:
            fp += tm_ * tn_ * 4
        return fp

    a_tm = None
    a_tn = None
    a_tk = nx
    split_k = False
    w_resident = False

    # Path A: weight-resident single-K (W DMA'd exactly once, 1-D grid over M).
    for tm_ in m_cands:
        if footprint(tm_, nf_p, nx, acc=False) <= budget:
            a_tm, a_tn, w_resident = tm_, nf_p, True
            break

    if w_resident and M_p >= 16 and M_p // a_tm < 2:
        # v7x megacore: expose >= 2 parallel blocks when there is enough work.
        for tm_ in m_cands:
            if M_p // tm_ >= 2 and footprint(tm_, nf_p, nx, acc=False) <= budget:
                a_tm = tm_
                break

    if not w_resident:
        # Path B: single-K, tiled over M and N (grid order chosen below).
        n_cands = [t for t in (512, 256, 128) if nf_p % t == 0]
        for tn_ in n_cands:
            for tm_ in m_cands:
                if footprint(tm_, tn_, nx, acc=False) <= budget:
                    a_tm, a_tn = tm_, tn_
                    break
            if a_tm is not None:
                break

    if a_tm is None:
        # Path C: split-K with f32 accumulator (very large nx only).
        split_k = True
        n_cands = [t for t in (512, 256, 128) if nf_p % t == 0]
        a_tn = n_cands[0]
        for tk_ in (2048, 1024, 512, 256, 128):   # prefer >= 256-wide K steps
            for tm_ in m_cands:
                if footprint(tm_, a_tn, tk_, acc=True) <= budget:
                    a_tm, a_tk = tm_, tk_
                    break
            if a_tm is not None:
                break
        if a_tm is None:
            a_tm, a_tk, a_tn = 8, 128, 128

    # ---------------- user overrides ----------------
    if tn is not None:
        a_tn = tn
        if a_tn != nf_p:
            w_resident = False
    if tm is not None:
        a_tm = tm
    if tk is not None:
        a_tk = _round_up(max(tk, 128), 128)
        if a_tk < nx and a_tk < 256 and nx >= 256:
            a_tk = 256            # tk < 256 is accumulator-RMW / overhead bound
        if a_tk >= nx:
            a_tk = nx
            split_k = False
        else:
            split_k = True
            w_resident = False

    # Tile legality: (8, 128) rule + exact grids.
    assert a_tm % 8 == 0, "tm must be a multiple of 8"
    assert M_p % a_tm == 0, "tm must divide the 8-aligned M"
    assert a_tn % 128 == 0 and nf_p % a_tn == 0, "tn must be a multiple of 128 dividing nf_p"
    assert a_tk == nx or a_tk % 128 == 0, "tk must equal nx or be a multiple of 128"

    # ---------------- padding (only when actually needed) ----------------
    nx_k = nx if not split_k else _round_up(nx, a_tk)
    if M_p != M or nx_k != nx:
        x2d = jnp.pad(x2d, ((0, M_p - M), (0, nx_k - nx)))
    w = weight
    if nx_k != nx or nf_p != nf:
        w = jnp.pad(weight, ((0, nx_k - nx), (0, nf_p - nf)))
    bias2d = jnp.pad(bias.astype(jnp.float32), (0, nf_p - nf)).reshape(1, nf_p)

    gm = M_p // a_tm
    gn = nf_p // a_tn

    cost = pl.CostEstimate(
        flops=2 * M_p * nx_k * nf_p,
        transcendentals=0,
        bytes_accessed=(M_p * nx_k * x_bytes + nx_k * nf_p * w_bytes
                        + nf_p * 4 + M_p * nf_p * out_bytes),
    )

    scratch_shapes = []
    if w_resident:
        # 1-D grid over M; W / bias block index is constant -> fetched once.
        grid_spec = pltpu.PrefetchScalarGridSpec(
            num_scalar_prefetch=0,
            grid=(gm,),
            in_specs=[
                pl.BlockSpec((a_tm, nx_k), lambda i: (i, 0)),
                pl.BlockSpec((nx_k, nf_p), lambda i: (0, 0)),
                pl.BlockSpec((1, nf_p), lambda i: (0, 0)),
            ],
            out_specs=pl.BlockSpec((a_tm, nf_p), lambda i: (i, 0)),
        )
        dims = ("parallel",)
        kernel = _kernel_single_k
    elif not split_k:
        # 2-D grid; put the re-streamed (inner) axis on the smaller operand.
        x_total = M_p * nx_k * x_bytes
        w_total = nx_k * nf_p * w_bytes
        m_outer = gm * w_total <= gn * x_total
        if m_outer:
            grid = (gm, gn)
            x_map = lambda i, j: (i, 0)
            w_map = lambda i, j: (0, j)
            b_map = lambda i, j: (0, j)
            o_map = lambda i, j: (i, j)
        else:
            grid = (gn, gm)
            x_map = lambda j, i: (i, 0)
            w_map = lambda j, i: (0, j)
            b_map = lambda j, i: (0, j)
            o_map = lambda j, i: (i, j)
        grid_spec = pltpu.PrefetchScalarGridSpec(
            num_scalar_prefetch=0,
            grid=grid,
            in_specs=[
                pl.BlockSpec((a_tm, nx_k), x_map),
                pl.BlockSpec((nx_k, a_tn), w_map),
                pl.BlockSpec((1, a_tn), b_map),
            ],
            out_specs=pl.BlockSpec((a_tm, a_tn), o_map),
        )
        dims = ("parallel", "parallel")
        kernel = _kernel_single_k
    else:
        scratch_shapes = [pltpu.VMEM((a_tm, a_tn), jnp.float32)]
        grid_spec = pltpu.PrefetchScalarGridSpec(
            num_scalar_prefetch=0,
            grid=(gm, gn, nx_k // a_tk),
            in_specs=[
                pl.BlockSpec((a_tm, a_tk), lambda i, j, k: (i, k)),
                pl.BlockSpec((a_tk, a_tn), lambda i, j, k: (k, j)),
                pl.BlockSpec((1, a_tn), lambda i, j, k: (0, j)),
            ],
            out_specs=pl.BlockSpec((a_tm, a_tn), lambda i, j, k: (i, j)),
            scratch_shapes=scratch_shapes,
        )
        dims = ("parallel", "parallel", "arbitrary")
        kernel = _kernel_split_k

    out2d = pl.pallas_call(
        kernel,
        out_shape=jax.ShapeDtypeStruct((M_p, nf_p), out_dtype),
        grid_spec=grid_spec,
        compiler_params=pltpu.CompilerParams(
            dimension_semantics=dims,
            vmem_limit_bytes=int(vmem_limit),
        ),
        cost_estimate=cost,
    )(x2d, w, bias2d)

    if M_p != M or nf_p != nf:
        out2d = out2d[:M, :nf]
    return out2d.reshape(*lead_shape, nf)


if __name__ == "__main__":
    # Module config: nx = 32 (input features), nf = 64 (output features)
    nx, nf = 32, 64
    batch, seq = 2, 8

    key = jax.random.PRNGKey(0)
    k_w, k_x, k_x2, k_w3, k_x3 = jax.random.split(key, 5)

    # Deterministic init mirroring Conv1D.__init__: weight ~ N(0, 0.02), bias = 0
    weight = (0.02 * jax.random.normal(k_w, (nx, nf))).astype(jnp.float32)
    bias = jnp.zeros((nf,), dtype=jnp.float32)
    x = jax.random.normal(k_x, (batch, seq, nx), dtype=jnp.float32)

    out = jax.block_until_ready(conv1d(x, weight, bias))
    ref = (x.reshape(-1, nx) @ weight + bias).reshape(batch, seq, nf)
    assert out.shape == (batch, seq, nf)
    assert jnp.allclose(out, ref, atol=1e-5, rtol=1e-5)

    # Ragged leading dims (batch*seq = 21) + nonzero bias: exercises the
    # M-to-multiple-of-8 padding, nf padding and the fused bias add.
    bias_nz = 0.01 * jnp.arange(nf, dtype=jnp.float32)
    x2 = jax.random.normal(k_x2, (3, 7, nx), dtype=jnp.float32)
    out2 = jax.block_until_ready(conv1d(x2, weight, bias_nz))
    ref2 = (x2.reshape(-1, nx) @ weight + bias_nz).reshape(3, 7, nf)
    assert out2.shape == (3, 7, nf)
    assert jnp.allclose(out2, ref2, atol=1e-5, rtol=1e-5)

    # Native bf16 MXU path: weights/activations kept in bf16 by the caller
    # (no wrapper-side casts), f32 accumulation inside the kernel.
    w_bf16 = weight.astype(jnp.bfloat16)
    x_bf16 = x.astype(jnp.bfloat16)
    out_bf = jax.block_until_ready(conv1d(x_bf16, w_bf16, bias))
    ref_bf = (x_bf16.astype(jnp.float32).reshape(-1, nx)
              @ w_bf16.astype(jnp.float32) + bias).reshape(batch, seq, nf)
    assert out_bf.dtype == jnp.bfloat16
    assert jnp.allclose(out_bf.astype(jnp.float32), ref_bf, atol=2e-2, rtol=2e-2)

    # Force the split-K accumulator path (tk=256 < nx=512) to validate it too.
    nx3 = 512
    w3 = (0.02 * jax.random.normal(k_w3, (nx3, nf))).astype(jnp.float32)
    x3 = jax.random.normal(k_x3, (batch, seq, nx3), dtype=jnp.float32)
    out3 = jax.block_until_ready(conv1d(x3, w3, bias_nz, tk=256))
    ref3 = (x3.reshape(-1, nx3) @ w3 + bias_nz).reshape(batch, seq, nf)
    assert jnp.allclose(out3, ref3, atol=1e-4, rtol=1e-4)

    print("KERNEL_OK")
</pallas_src>

<mosaic_0001>
module attributes {stable_mosaic.version = 11 : i64} {
  func.func @_kernel_single_k(%arg0: i32, %arg1: memref<8x32xf32, #tpu.memory_space<vmem>>, %arg2: memref<32x128xf32, #tpu.memory_space<vmem>>, %arg3: memref<1x128xf32, #tpu.memory_space<vmem>>, %arg4: memref<8x128xf32, #tpu.memory_space<vmem>>) attributes {dimension_semantics = [#tpu.dimension_semantics<parallel>], iteration_bounds = array<i64: 2>, scalar_prefetch = 0 : i64, scratch_operands = 0 : i64, tpu.core_type = #tpu.core_type<tc>, window_params = [{transform_indices = @transform_0, window_bounds = array<i64: 8, 32>}, {pipeline_mode = #tpu.pipeline_mode<synchronous>, transform_indices = @transform_1, window_bounds = array<i64: 32, 128>}, {pipeline_mode = #tpu.pipeline_mode<synchronous>, transform_indices = @transform_2, window_bounds = array<i64: 1, 128>}, {transform_indices = @transform_3, window_bounds = array<i64: 8, 128>}]} {
    %c0 = arith.constant 0 : index
    %c0_0 = arith.constant 0 : index
    %0 = vector.load %arg1[%c0, %c0_0] : memref<8x32xf32, #tpu.memory_space<vmem>>, vector<8x32xf32>
    %c0_1 = arith.constant 0 : index
    %c0_2 = arith.constant 0 : index
    %1 = vector.load %arg2[%c0_1, %c0_2] : memref<32x128xf32, #tpu.memory_space<vmem>>, vector<32x128xf32>
    %cst = arith.constant dense<0.000000e+00> : vector<8x128xf32>
    %2 = tpu.matmul %0, %1, %cst {dimension_numbers = #tpu.dot_dimension_numbers<[1], [0], [0], [1], [0, 0, 1, 1], [], []>} : vector<8x32xf32>, vector<32x128xf32>, vector<8x128xf32> -> vector<8x128xf32>
    %c0_3 = arith.constant 0 : index
    %c0_4 = arith.constant 0 : index
    %3 = vector.load %arg3[%c0_3, %c0_4] : memref<1x128xf32, #tpu.memory_space<vmem>>, vector<1x128xf32>
    %4 = vector.broadcast %3 : vector<1x128xf32> to vector<8x128xf32>
    %5 = arith.addf %2, %4 : vector<8x128xf32>
    %c0_5 = arith.constant 0 : index
    %c0_6 = arith.constant 0 : index
    %6 = vector.load %arg4[%c0_5, %c0_6] : memref<8x128xf32, #tpu.memory_space<vmem>>, vector<8x128xf32>
    tpu.vector_store %arg4[%c0_5, %c0_6], %5 {strides = array<i32>} : memref<8x128xf32, #tpu.memory_space<vmem>>, vector<8x128xf32>,
    return
  }
  func.func @transform_0(%arg0: i32) -> (i32, i32) {
    %c0_i32 = arith.constant 0 : i32
    %c0_i32_0 = arith.constant 0 : i32
    return %arg0, %c0_i32 : i32, i32
  }
  func.func @transform_1(%arg0: i32) -> (i32, i32) {
    %c0_i32 = arith.constant 0 : i32
    %c0_i32_0 = arith.constant 0 : i32
    %c0_i32_1 = arith.constant 0 : i32
    return %c0_i32, %c0_i32_0 : i32, i32
  }
  func.func @transform_2(%arg0: i32) -> (i32, i32) {
    %c0_i32 = arith.constant 0 : i32
    %c0_i32_0 = arith.constant 0 : i32
    %c0_i32_1 = arith.constant 0 : i32
    return %c0_i32, %c0_i32_0 : i32, i32
  }
  func.func @transform_3(%arg0: i32) -> (i32, i32) {
    %c0_i32 = arith.constant 0 : i32
    %c0_i32_0 = arith.constant 0 : i32
    return %arg0, %c0_i32 : i32, i32
  }
}

</mosaic_0001>

<bundles_post_ra>
// kernel: conv1d.1
= control target key start
LH: loop header
LB: loop body
LE: loop exit
PB: predicated region body
PF: predicated region fallthrough
CT: control target
= control target key end

     0   :  { %s381_s12 = smov 0   ;;  %s413_s0 = inlined_call_operand.vmem [shape: f32[16,32], index: 0, kind: input, shape index: {}]   ;;  %s414_s1 = inlined_call_operand.vmem [shape: f32[32,128], index: 1, kind: input, shape index: {}]   ;;  %s415_s2 = inlined_call_operand.vmem [shape: f32[1,128], index: 2, kind: input, shape index: {}]   ;;  %s416_s3 = inlined_call_operand.vmem [shape: f32[16,128], index: 3, kind: output, shape index: {}]  }
   0x1 LB: > { %s306_s13 = sadd.s32 4294967295, %s356_s12   ;;  %p310_p0 = scmp.ge.s32.totalorder %s356_s12, 1  ;;  %s356_s12 = sphi %s381_s12, %s13_s12  }
   0x2   : > { %p136_p1 = scmp.lt.s32.totalorder %s356_s12, 3 }
   0x4   : > { %p137_p2 = pnand %p310_p0, %p136_p1 }
   0x5   : > { %v167_v0 = vld [vmem:[%s414_s1] sm:$0xff] (!%p137_p2)  ;;  %v168_v1 = vld [vmem:[%s414_s1 + $0x8] sm:$0xff] (!%p137_p2)  ;;  %v169_v2 = vld [vmem:[%s414_s1 + $0x10] sm:$0xff] (!%p137_p2)  ;;  %v358_v3 = vmov (!%p137_p2), 0.0|0.0   ;;  %vm359_vm0 = vmmov (!%p137_p2), 0   ;;  %v360_v6 = vmov (!%p137_p2), 0.0  }
   0x6   : > { %140 = sbr.rel (%p137_p2) target bundleno = 232 (0xe8), region = 32  ;;  %333 = vmatprep.subr.bf16.mxu0 (!%p137_p2), %v358_v3  ;;  %v334_v4 = vpack.c.bf16 (!%p137_p2), %v168_v1, %v167_v0  ;;  %v170_v5 = vld [vmem:[%s414_s1 + $0x18] sm:$0xff] (!%p137_p2)  ;;  %330 = vmatprep.mubr.msk.f32.mxu0 (!%p137_p2), %vm359_vm0, %v360_v6  ;;  %p158_p3 = scmp.lt.s32.totalorder (!%p137_p2), %s306_s13, 1  ;;  %vm178_vm1 = vcmask (!%p137_p2), 261120   ;;  %v313_v9 = vld [vmem:[%s415_s2] ss:$0 sm:$0xff] (!%p137_p2) }
   0x7   : > { %v337_v7 = vpack.c.bf16 (!%p137_p2), %v170_v5, %v169_v2 }
   0x8   : > { %335 = vmatpush3.bf16.msra.mxu0 (!%p137_p2), %v334_v4 }
   0x9   : > { %336 = vmatprep.subr.bf16.mxu0 (!%p137_p2), %v358_v3 }
   0xc   : > { %338 = vmatpush3.bf16.msra.mxu0 (!%p137_p2), %v337_v7 }
   0xd   : > { %s418_s13 = smov (!%p158_p3, %s306_s13), 1 }
   0xe   : > { %s311_s22 = sshll.u32 %s418_s13, 3 }
   0xf   : > { %s161_s25 = scalar_lea.vmem %s413_s0, %s311_s22  ;;  %s165_s30 = scalar_lea.vmem %s416_s3, %s311_s22 }
  0x10   : > { %v166_v8 = vld [vmem:[%s161_s25] sm:$0xff] }
  0x11   : > { %331 = vmatmul.mubr.msk.f32.vlgmr.msra.gmra.mrb[0].mxu0 %vm178_vm1, %v166_v8 }
  0xe4   : > { %v248_v10 = vpop.f32.mrb[0].mxu0 }
  0xe5   : > { %v249_v11 = vadd.f32 %v313_v9, %v248_v10  ;;  %v332_v12 = vpop.f32.mrb[1].mxu0 }
  0xe7   : > { %252 = vst [vmem:[%s165_s30] sm:$0xff] %v249_v11 }
  0xe8 PF: > { %s13_s12 = sadd.s32 1, %s356_s12  }
  0xe9   : > { %p10_p4 = scmp.ge.s32.totalorder %s13_s12, 4  }
  0xeb   :  { %12 = sbr.rel (!%p10_p4) target bundleno = 1 (0x1), region = 62 }

</bundles_post_ra>
